<compile_context>
chip_gen: v6e
topology: v6e:2x2x1
jax: 0.10.0
libtpu: 0.0.40
codegen_flags: <defaults>
</compile_context>

<pallas_src>
import jax
import jax.numpy as jnp
from jax.experimental import pallas as pl
from jax.experimental.pallas import tpu as pltpu

_LANE = 128
# ~2 MiB blocks: 2 arrays (in + out) x 2 pipeline buffers x 2 MiB = 8 MiB,
# comfortably inside every generation's default scoped VMEM.
_TARGET_BLOCK_BYTES = 2 * 1024 * 1024


def _copy_kernel(x_ref, o_ref):
    # Identity encoding: pass the raw feature block straight through.
    o_ref[...] = x_ref[...]


def _choose_tile_rows(n_rows: int, row_bytes: int) -> int:
    """Pick a sublane-aligned row tile targeting ~2 MiB per block."""
    tr = max(1, _TARGET_BLOCK_BYTES // max(1, row_bytes))
    if tr >= n_rows:
        return n_rows               # single block == full dim (always legal)
    tr = max(8, (tr // 8) * 8)      # multiple of 8 sublanes
    return min(tr, n_rows)


def _tiled_copy_2d(x2d: jax.Array) -> jax.Array:
    """Tiled, double-buffered HBM->HBM copy of a 2D slab through VMEM."""
    rows, cols = x2d.shape
    itemsize = jnp.dtype(x2d.dtype).itemsize
    tile_rows = _choose_tile_rows(rows, cols * itemsize)
    return pl.pallas_call(
        _copy_kernel,
        out_shape=jax.ShapeDtypeStruct((rows, cols), x2d.dtype),
        grid=(pl.cdiv(rows, tile_rows),),
        in_specs=[pl.BlockSpec((tile_rows, cols), lambda i: (i, 0))],
        out_specs=pl.BlockSpec((tile_rows, cols), lambda i: (i, 0)),
        compiler_params=pltpu.CompilerParams(
            dimension_semantics=("parallel",),
        ),
    )(x2d)


def raw_feat_encoding(
    raw_feat: jax.Array, embed_dim: int, *, materialize: bool = False
) -> jax.Array:
    """Pallas equivalent of RawFeatEncoding.forward.

    raw_feat: (..., embed_dim) raw feature tensor.
    materialize=False (default): zero-cost identity (return the input).
    materialize=True: produce a fresh buffer via the tiled Pallas copy kernel.
    """
    assert raw_feat.shape[-1] == embed_dim, "trailing dim must equal embed_dim"

    if not materialize:
        # Identity encoding: the fastest kernel is no kernel.
        return raw_feat

    shape = raw_feat.shape
    total = raw_feat.size
    if total % _LANE == 0:
        # Lane-dense slab: unmasked 128-lane loads/stores regardless of embed_dim.
        x2d = raw_feat.reshape(total // _LANE, _LANE)
    else:
        # Fallback: (prod(leading), embed_dim) — last dim is the full feature
        # dim, so the BlockSpec is always legal (possibly masked if D < 128).
        x2d = raw_feat.reshape(-1, shape[-1])
    return _tiled_copy_2d(x2d).reshape(shape)


class RawFeatEncoding:
    """Raw feature encoding (identity encoding) — JAX/Pallas version."""

    def __init__(self, embed_dim: int):
        self.embed_dim = embed_dim
        # No parameters: the PyTorch __init__ defines none.

    @property
    def embedding_dim(self) -> int:
        return self.embed_dim

    def forward(self, raw_feat: jax.Array, *, materialize: bool = False) -> jax.Array:
        """Pass along the raw feature data.

        Matches the PyTorch semantics (identity).  Set materialize=True to
        force a materialized copy through the Pallas kernel.
        """
        # TODO(synk): the PyTorch Feature.get_raw_data() accessor has no JAX
        # analogue; the raw feature array is passed in directly.
        return raw_feat_encoding(raw_feat, self.embed_dim, materialize=materialize)


if __name__ == "__main__":
    key = jax.random.PRNGKey(0)
    batch, seq, embed_dim = 2, 8, 32

    # Deterministic synthetic "raw feature data" (what feat.get_raw_data()
    # would return for a feature with embedding dim = embed_dim).
    raw_feat = jax.random.normal(key, (batch, seq, embed_dim), dtype=jnp.float32)

    enc = RawFeatEncoding(embed_dim)

    # Default forward: zero-cost identity pass-through (no kernel).
    out_fast = enc.forward(raw_feat)
    assert out_fast.shape == raw_feat.shape and out_fast.dtype == raw_feat.dtype
    assert bool(jnp.array_equal(out_fast, raw_feat))

    # Materialized path: run the Pallas tiled copy kernel once.
    out = enc.forward(raw_feat, materialize=True)
    out = jax.block_until_ready(out)

    # Semantics check: identity pass-through.
    assert out.shape == raw_feat.shape and out.dtype == raw_feat.dtype
    assert bool(jnp.array_equal(out, raw_feat))

    print("KERNEL_OK")
</pallas_src>

<mosaic_0001>
module attributes {stable_mosaic.version = 11 : i64} {
  func.func @_copy_kernel(%arg0: i32, %arg1: memref<4x128xf32, #tpu.memory_space<vmem>>, %arg2: memref<4x128xf32, #tpu.memory_space<vmem>>) attributes {dimension_semantics = [#tpu.dimension_semantics<parallel>], iteration_bounds = array<i64: 1>, scalar_prefetch = 0 : i64, scratch_operands = 0 : i64, tpu.core_type = #tpu.core_type<tc>, window_params = [{transform_indices = @transform_0, window_bounds = array<i64: 4, 128>}, {transform_indices = @transform_1, window_bounds = array<i64: 4, 128>}]} {
    %c0 = arith.constant 0 : index
    %c0_0 = arith.constant 0 : index
    %0 = vector.load %arg1[%c0, %c0_0] : memref<4x128xf32, #tpu.memory_space<vmem>>, vector<4x128xf32>
    %c0_1 = arith.constant 0 : index
    %c0_2 = arith.constant 0 : index
    %1 = vector.load %arg2[%c0_1, %c0_2] : memref<4x128xf32, #tpu.memory_space<vmem>>, vector<4x128xf32>
    tpu.vector_store %arg2[%c0_1, %c0_2], %0 {strides = array<i32>} : memref<4x128xf32, #tpu.memory_space<vmem>>, vector<4x128xf32>,
    return
  }
  func.func @transform_0(%arg0: i32) -> (i32, i32) {
    %c0_i32 = arith.constant 0 : i32
    %c0_i32_0 = arith.constant 0 : i32
    return %arg0, %c0_i32 : i32, i32
  }
  func.func @transform_1(%arg0: i32) -> (i32, i32) {
    %c0_i32 = arith.constant 0 : i32
    %c0_i32_0 = arith.constant 0 : i32
    return %arg0, %c0_i32 : i32, i32
  }
}

</mosaic_0001>

<bundles_post_ra>
// kernel: tpu_custom_call.1
= control target key start
LH: loop header
LB: loop body
LE: loop exit
PB: predicated region body
PF: predicated region fallthrough
CT: control target
= control target key end

     0   :  { %6 = vsyncpa [#allocation3], 0  ;;  %s102_s0 = inlined_call_operand.hbm [shape: f32[4,128], index: 0, kind: input, shape index: {}]   ;;  %s103_s1 = inlined_call_operand.hbm [shape: f32[4,128], index: 1, kind: output, shape index: {}]  }
   0x1   :  { %7 = vsyncpa [#allocation4], 0  ;;  %s84_s6 = smov [#allocation2]  }
   0x2   :  { %s14_s7 = sshll.u32 %s84_s6, 4  ;;  %s15_s7 = int_to_ptr.vmem [resolvable:$true] %s14_s7 }
   0x3   :  { %s48_s8 = scalar_lea.vmem %s15_s7, 64  ;;  %p53_p1 = scmp.lt.s32.totalorder %s15_s7, %s15_s7 }
   0x4   :  { %p49_p0 = scmp.ne.s32.totalorder %s15_s7, %s48_s8  ;;  %p54_p2 = scmp.lt.s32.totalorder %s48_s8, %s48_s8 }
   0x6   :  { %p55_p3 = por %p54_p2, %p53_p1 }
   0x8   :  { %p56_p4 = pnand %p55_p3, %p49_p0 }
   0xa   :  { %59 = shalt.err (!%p56_p4)
}
   0xb   :  { %17 = dma.hbm_to_vmem [thread:$0]  %s102_s0, 64, %s15_s7, [#allocation3]  }
   0xc   :  { %80 = dma.done.wait [#allocation3], 64  }
   0xd   :  { %81 = vsyncadd [#allocation3], 4294967232  ;;  %s85_s11 = smov [#allocation5]   ;;  %v21_v0 = vld [vmem:[#allocation2] sm:$0xf] }
   0xe   :  { %s29_s12 = sshll.u32 %s85_s11, 4  ;;  %22 = vst [vmem:[#allocation5] sm:$0xf] %v21_v0  ;;  %s30_s12 = int_to_ptr.vmem [resolvable:$true] %s29_s12 }
   0xf   :  { %s60_s13 = scalar_lea.vmem %s30_s12, 64  ;;  %p65_p6 = scmp.lt.s32.totalorder %s30_s12, %s30_s12 }
  0x10   :  { %p61_p5 = scmp.ne.s32.totalorder %s30_s12, %s60_s13  ;;  %p66_p7 = scmp.lt.s32.totalorder %s60_s13, %s60_s13 }
  0x12   :  { %p67_p8 = por %p66_p7, %p65_p6 }
  0x14   :  { %p68_p9 = pnand %p67_p8, %p61_p5 }
  0x16   :  { %71 = shalt.err (!%p68_p9)
}
  0x17   :  { %32 = dma.vmem_to_hbm [thread:$0]  %s30_s12, 64, %s103_s1, [#allocation4]  }
  0x18   :  { %82 = dma.done.wait [#allocation4], 64  }
  0x19   :  { %83 = vsyncadd [#allocation4], 4294967232 }
  0x1a   :  { %36 = vsyncpa [#allocation3], 1 }
  0x1b   :  { %37 = vsyncpa [#allocation4], 1 }

</bundles_post_ra>
